<compile_context>
chip_gen: v6e
topology: v6e:2x2x1
jax: 0.10.0
libtpu: 0.0.40
codegen_flags: <defaults>
</compile_context>

<pallas_src>
import jax
import jax.numpy as jnp
from jax.experimental import pallas as pl
from jax.experimental.pallas import tpu as pltpu

EPS = 1e-12   # matches torch.nn.functional.normalize default eps
LANES = 128


def _round_up(x, m):
    return ((x + m - 1) // m) * m


def _tpu_vmem_and_cores():
    """(physical VMEM bytes per core, TensorCores sharing the parallel axis)."""
    vmem_cap = 64 * 1024 * 1024            # conservative default (v7x per-TC)
    num_cores = 1
    try:
        info = pltpu.get_tpu_info()
        vmem_cap = int(getattr(info, "vmem_capacity_bytes", vmem_cap))
    except Exception:
        pass
    try:
        kind = jax.devices()[0].device_kind.lower()
        if "v7" in kind:
            num_cores = 2                  # v7x: 2 TCs shard the parallel axis
    except Exception:
        pass
    return vmem_cap, num_cores


def _choose_tile_and_vmem(rows, lanes, itemsize, vmem_cap, num_cores,
                          const_bytes=0):
    """Pick a sublane-aligned row tile and a footprint-derived VMEM limit."""
    align = max(8, 32 // max(itemsize, 1))     # 8 (f32) / 16 (bf16) / 32 (int8)
    # Footprint model per tile row: double-buffered in + out tiles in the
    # original dtype plus ~4 full-tile f32 intermediates in the kernel body.
    per_row = lanes * (4 * itemsize + 4 * 4)
    budget = max(vmem_cap // 2 - 2 * const_bytes - (2 << 20), per_row * align)
    t = max(align, (budget // max(per_row, 1)) // align * align)
    if num_cores > 1 and rows >= num_cores * align:
        # Dual-TC (v7x): keep at least num_cores balanced steps.
        t = min(t, _round_up(pl.cdiv(rows, num_cores), align))
    t = min(t, _round_up(rows, align))
    if rows < align:
        t = rows                               # block == full array on sublanes
    t = max(int(t), 1)
    if num_cores > 1:
        steps = pl.cdiv(rows, t)
        if steps > 1 and steps % num_cores != 0:
            # Prefer a step count divisible by the core count so no TC idles.
            t2 = max(align, _round_up(pl.cdiv(rows, _round_up(steps, num_cores)),
                                      align))
            if pl.cdiv(rows, t2) % num_cores == 0:
                t = int(t2)
    tile_io = t * lanes * itemsize
    tile_f32 = t * lanes * 4
    need = 4 * tile_io + 4 * tile_f32 + 2 * const_bytes + (4 << 20)
    vmem_limit = int(min(max(need, 32 << 20), vmem_cap * 3 // 4))
    return t, vmem_limit


def _rowwise_kernel(w_ref, x_ref, o_ref):
    # x_ref/o_ref: (TR, D) tile, one logical row per physical row.
    x = x_ref[...].astype(jnp.float32)
    sq_sum = jnp.sum(x * x, axis=-1, keepdims=True)                 # (TR, 1)
    # weight * rsqrt(max(s, eps^2)) == weight / max(sqrt(s), eps)
    scale = w_ref[0] * jax.lax.rsqrt(jnp.maximum(sq_sum, EPS * EPS))
    o_ref[...] = (x * scale).astype(o_ref.dtype)


def _packed_kernel(w_ref, seg_ref, x_ref, o_ref):
    # x_ref/o_ref: (TR, 128) tiles; each physical row packs 128 // D logical
    # rows of length D along the lane axis.  seg_ref is a constant 128x128
    # block-diagonal ones matrix: one MXU matmul both computes every segment's
    # sum of squares and broadcasts it back to all of that segment's lanes.
    x = x_ref[...].astype(jnp.float32)
    sq = x * x
    s = jnp.dot(sq, seg_ref[...], preferred_element_type=jnp.float32)
    scale = w_ref[0] * jax.lax.rsqrt(jnp.maximum(s, EPS * EPS))
    o_ref[...] = (x * scale).astype(o_ref.dtype)


def _segment_matrix(d):
    seg_id = jnp.arange(LANES, dtype=jnp.int32) // d
    return (seg_id[:, None] == seg_id[None, :]).astype(jnp.float32)


def _normalize_rows_jax(x_rows, w32):
    # Tiny epilogue for the <= G-1 leftover rows of the packed path.
    xf = x_rows.astype(jnp.float32)
    nrm = jnp.sqrt(jnp.sum(xf * xf, axis=-1, keepdims=True))
    return (w32[0] * (xf / jnp.maximum(nrm, EPS))).astype(x_rows.dtype)


def weighted_normalization(x, weight):
    """Pallas TPU implementation of WeightedNormalization.forward.

    x: array of shape (..., D); weight: array of shape (1,).
    Returns weight * (x / max(||x||_2, 1e-12)) along the last dim, in x.dtype.
    """
    orig_shape = x.shape
    orig_dtype = x.dtype
    D = int(orig_shape[-1])
    M = 1
    for s in orig_shape[:-1]:
        M *= int(s)
    if M == 0 or D == 0:
        return x

    x2d = x.reshape(M, D)
    w32 = jnp.reshape(weight, (-1,))[:1].astype(jnp.float32)        # (1,)
    itemsize = jnp.dtype(orig_dtype).itemsize
    vmem_cap, num_cores = _tpu_vmem_and_cores()

    def _params(limit):
        return pltpu.CompilerParams(dimension_semantics=("parallel",),
                                    vmem_limit_bytes=limit)

    use_packed = (0 < D < LANES) and (D & (D - 1) == 0)
    # TODO(synk): D < 128 that is NOT a power of two falls through to the
    # row-wise path below, whose < 128-lane output blocks hit masked vst.msk
    # stores; add a lane-padded packed variant if such D shows up in prod.
    if use_packed:
        G = LANES // D
        rem = M % G
        main = M - rem
        if main == 0:
            use_packed = False           # tiny input: row-wise path handles it

    if use_packed:
        R = main // G
        # Copy-free reshape when M % G == 0; otherwise a single prefix slice
        # (no whole-tensor pad + prefix-slice like before).
        xp = (x2d[:main] if rem else x2d).reshape(R, LANES)
        seg = _segment_matrix(D)
        tr, vmem_limit = _choose_tile_and_vmem(
            R, LANES, itemsize, vmem_cap, num_cores,
            const_bytes=LANES * LANES * 4)
        grid = (pl.cdiv(R, tr),)

        outp = pl.pallas_call(
            _packed_kernel,
            out_shape=jax.ShapeDtypeStruct((R, LANES), orig_dtype),
            grid_spec=pltpu.PrefetchScalarGridSpec(
                num_scalar_prefetch=1,                         # weight -> SMEM
                grid=grid,
                in_specs=[
                    pl.BlockSpec((LANES, LANES), lambda i, w: (0, 0)),  # seg
                    pl.BlockSpec((tr, LANES), lambda i, w: (i, 0)),     # x tile
                ],
                out_specs=pl.BlockSpec((tr, LANES), lambda i, w: (i, 0)),
            ),
            compiler_params=_params(vmem_limit),
        )(w32, seg, xp)

        out_main = outp.reshape(main, D)
        if rem:
            tail = _normalize_rows_jax(x2d[main:], w32)        # <= G-1 rows
            out2d = jnp.concatenate([out_main, tail], axis=0)
        else:
            out2d = out_main
        return out2d.reshape(orig_shape)

    # Lane-dense / fallback path: one logical row per physical row, reduce
    # along lanes (D >= 128, small non-power-of-two D, or M < G).
    # TODO(synk): for extremely large D the whole-row block may not fit VMEM;
    # a D-tiled two-pass variant would be needed for such shapes.
    tr, vmem_limit = _choose_tile_and_vmem(M, D, itemsize, vmem_cap, num_cores)
    grid = (pl.cdiv(M, tr),)
    out2d = pl.pallas_call(
        _rowwise_kernel,
        out_shape=jax.ShapeDtypeStruct((M, D), orig_dtype),
        grid_spec=pltpu.PrefetchScalarGridSpec(
            num_scalar_prefetch=1,                             # weight -> SMEM
            grid=grid,
            in_specs=[pl.BlockSpec((tr, D), lambda i, w: (i, 0))],
            out_specs=pl.BlockSpec((tr, D), lambda i, w: (i, 0)),
        ),
        compiler_params=_params(vmem_limit),
    )(w32, x2d)
    return out2d.reshape(orig_shape)


if __name__ == "__main__":
    key = jax.random.PRNGKey(0)
    # Small shape consistent with the module: normalize over the last dim.
    x = jax.random.normal(key, (2, 4, 16, 16), dtype=jnp.float32)
    weight = jnp.ones((1,), dtype=jnp.float32)   # nn.Parameter(torch.ones(1))

    out = jax.block_until_ready(weighted_normalization(x, weight))

    # Plain-JAX reference (same semantics as F.normalize(p=2, dim=-1) * weight).
    norm = jnp.sqrt(jnp.sum(x.astype(jnp.float32) ** 2, axis=-1, keepdims=True))
    ref = weight[0] * (x / jnp.maximum(norm, EPS))
    assert out.shape == x.shape and out.dtype == x.dtype
    assert jnp.allclose(out, ref, atol=1e-5, rtol=1e-5), float(
        jnp.max(jnp.abs(out - ref)))

    print("KERNEL_OK")
</pallas_src>

<mosaic_0001>
module attributes {stable_mosaic.version = 11 : i64} {
  func.func @_packed_kernel(%arg0: i32, %arg1: memref<1xf32, #tpu.memory_space<smem>>, %arg2: memref<128x128xf32, #tpu.memory_space<vmem>>, %arg3: memref<16x128xf32, #tpu.memory_space<vmem>>, %arg4: memref<16x128xf32, #tpu.memory_space<vmem>>) attributes {dimension_semantics = [#tpu.dimension_semantics<parallel>], iteration_bounds = array<i64: 1>, scalar_prefetch = 1 : i64, scratch_operands = 0 : i64, tpu.core_type = #tpu.core_type<tc>, window_params = [{pipeline_mode = #tpu.pipeline_mode<synchronous>, transform_indices = @transform_0, window_bounds = array<i64: 128, 128>}, {transform_indices = @transform_1, window_bounds = array<i64: 16, 128>}, {transform_indices = @transform_2, window_bounds = array<i64: 16, 128>}]} {
    %c0 = arith.constant 0 : index
    %c0_0 = arith.constant 0 : index
    %0 = vector.load %arg3[%c0, %c0_0] : memref<16x128xf32, #tpu.memory_space<vmem>>, vector<16x128xf32>
    %1 = arith.mulf %0, %0 : vector<16x128xf32>
    %c0_1 = arith.constant 0 : index
    %c0_2 = arith.constant 0 : index
    %2 = vector.load %arg2[%c0_1, %c0_2] : memref<128x128xf32, #tpu.memory_space<vmem>>, vector<128x128xf32>
    %cst = arith.constant dense<0.000000e+00> : vector<16x128xf32>
    %3 = tpu.matmul %1, %2, %cst {dimension_numbers = #tpu.dot_dimension_numbers<[1], [0], [0], [1], [0, 0, 1, 1], [], []>} : vector<16x128xf32>, vector<128x128xf32>, vector<16x128xf32> -> vector<16x128xf32>
    %c0_3 = arith.constant 0 : index
    %4 = memref.load %arg1[%c0_3] : memref<1xf32, #tpu.memory_space<smem>>
    %cst_4 = arith.constant 1.000000e-24 : f32
    %5 = vector.broadcast %cst_4 : f32 to vector<16x128xf32>
    %6 = arith.maximumf %3, %5 : vector<16x128xf32>
    %7 = math.rsqrt %6 : vector<16x128xf32>
    %8 = vector.broadcast %4 : f32 to vector<16x128xf32>
    %9 = arith.mulf %8, %7 : vector<16x128xf32>
    %10 = arith.mulf %0, %9 : vector<16x128xf32>
    %c0_5 = arith.constant 0 : index
    %c0_6 = arith.constant 0 : index
    %11 = vector.load %arg4[%c0_5, %c0_6] : memref<16x128xf32, #tpu.memory_space<vmem>>, vector<16x128xf32>
    tpu.vector_store %arg4[%c0_5, %c0_6], %10 {strides = array<i32>} : memref<16x128xf32, #tpu.memory_space<vmem>>, vector<16x128xf32>,
    return
  }
  func.func @transform_0(%arg0: i32, %arg1: memref<1xf32, #tpu.memory_space<smem>>) -> (i32, i32) {
    %c0_i32 = arith.constant 0 : i32
    %c0_i32_0 = arith.constant 0 : i32
    %c0_i32_1 = arith.constant 0 : i32
    return %c0_i32, %c0_i32_0 : i32, i32
  }
  func.func @transform_1(%arg0: i32, %arg1: memref<1xf32, #tpu.memory_space<smem>>) -> (i32, i32) {
    %c0_i32 = arith.constant 0 : i32
    %c0_i32_0 = arith.constant 0 : i32
    return %arg0, %c0_i32 : i32, i32
  }
  func.func @transform_2(%arg0: i32, %arg1: memref<1xf32, #tpu.memory_space<smem>>) -> (i32, i32) {
    %c0_i32 = arith.constant 0 : i32
    %c0_i32_0 = arith.constant 0 : i32
    return %arg0, %c0_i32 : i32, i32
  }
}

</mosaic_0001>

<bundles_post_ra>
// kernel: tpu_custom_call.1
= control target key start
LH: loop header
LB: loop body
LE: loop exit
PB: predicated region body
PF: predicated region fallthrough
CT: control target
= control target key end

     0   :  { %9 = vsyncpa [#allocation5], 0  ;;  %s341_s0 = inlined_call_operand.<no memory space> [shape: f32[1], index: 0, kind: input, shape index: {}]   ;;  %s342_s1 = inlined_call_operand.hbm [shape: f32[128,128], index: 1, kind: input, shape index: {}]   ;;  %s343_s2 = inlined_call_operand.hbm [shape: f32[16,128], index: 2, kind: input, shape index: {}]   ;;  %s344_s3 = inlined_call_operand.hbm [shape: f32[16,128], index: 3, kind: output, shape index: {}]  }
   0x1   :  { %10 = vsyncpa [#allocation8], 0 }
   0x2   :  { %11 = vsyncpa [#allocation6], 0  ;;  %s295_s12 = smov [#allocation4]  }
   0x3   :  { %s17_s13 = sshll.u32 %s295_s12, 4  ;;  %s18_s13 = int_to_ptr.vmem [resolvable:$true] %s17_s13 }
   0x4   :  { %s237_s14 = scalar_lea.vmem %s18_s13, 2048  ;;  %p242_p1 = scmp.lt.s32.totalorder %s18_s13, %s18_s13 }
   0x5   :  { %p238_p0 = scmp.ne.s32.totalorder %s18_s13, %s237_s14  ;;  %p243_p2 = scmp.lt.s32.totalorder %s237_s14, %s237_s14 }
   0x7   :  { %p244_p3 = por %p243_p2, %p242_p1 }
   0x9   :  { %p245_p4 = pnand %p244_p3, %p238_p0 }
   0xb   :  { %248 = shalt.err (!%p245_p4)
}
   0xc   :  { %s296_s15 = smov 128   ;;  %s297_s16 = smov 8  }
   0xd   :  { %23 = dma.hbm_to_vmem [thread:$0]  %s342_s1, 2048, %s18_s13, [#allocation5], %s296_s15, %s296_s15, %s297_s16  }
   0xe   :  { %s298_s19 = smov [#allocation7]  }
   0xf   :  { %s29_s20 = sshll.u32 %s298_s19, 4  ;;  %s30_s20 = int_to_ptr.vmem [resolvable:$true] %s29_s20 }
  0x10   :  { %s257_s21 = scalar_lea.vmem %s30_s20, 256  ;;  %p262_p6 = scmp.lt.s32.totalorder %s30_s20, %s30_s20 }
  0x11   :  { %p258_p5 = scmp.ne.s32.totalorder %s30_s20, %s257_s21  ;;  %p263_p7 = scmp.lt.s32.totalorder %s257_s21, %s257_s21 }
  0x13   :  { %p264_p8 = por %p263_p7, %p262_p6 }
  0x15   :  { %p265_p9 = pnand %p264_p8, %p258_p5 }
  0x17   :  { %268 = shalt.err (!%p265_p9)
}
  0x18   :  { %35 = dma.hbm_to_vmem [thread:$0]  %s343_s2, 256, %s30_s20, [#allocation8], %s296_s15, %s296_s15, %s297_s16  }
  0x19   :  { %289 = dma.done.wait [#allocation5], 2048  }
  0x1a   :  { %290 = vsyncadd [#allocation5], 4294965248 }
  0x1b   :  { %291 = dma.done.wait [#allocation8], 256  }
  0x1c   :  { %292 = vsyncadd [#allocation8], 4294967040  ;;  %v61_v0 = vld [vmem:[#allocation4 + $0x78] sm:$0xff]  ;;  %v60_v1 = vld [vmem:[#allocation4 + $0x70] sm:$0xff]  ;;  %v142_v24 = vstv %s341_s0  ;;  %s299_s24 = smov [#allocation9]  }
  0x1d   :  { %185 = vmatprep.subr.mxu0 %v61_v0  ;;  %v59_v2 = vld [vmem:[#allocation4 + $0x68] sm:$0xff]  ;;  %v58_v3 = vld [vmem:[#allocation4 + $0x60] sm:$0xff]  ;;  %v57_v5 = vld [vmem:[#allocation4 + $0x58] sm:$0xff]  ;;  %s154_s25 = sshll.u32 %s299_s24, 4  ;;  %s155_s25 = int_to_ptr.vmem [resolvable:$true] %s154_s25 }
  0x1e   :  { %186 = vmatpush3.msra.mxu0 %v61_v0  ;;  %v42_v4 = vld [vmem:[#allocation7] sm:$0xff]  ;;  %v56_v7 = vld [vmem:[#allocation4 + $0x50] sm:$0xff]  ;;  %v55_v8 = vld [vmem:[#allocation4 + $0x48] sm:$0xff]  ;;  %s269_s26 = scalar_lea.vmem %s155_s25, 256  ;;  %p274_p11 = scmp.lt.s32.totalorder %s155_s25, %s155_s25 }
  0x1f   :  { %187 = vmatprep.subr.mxu0 %v60_v1  ;;  %v44_v6 = vmul.f32 %v42_v4, %v42_v4  ;;  %v54_v9 = vld [vmem:[#allocation4 + $0x40] sm:$0xff]  ;;  %v53_v10 = vld [vmem:[#allocation4 + $0x38] sm:$0xff]  ;;  %v52_v11 = vld [vmem:[#allocation4 + $0x30] sm:$0xff]  ;;  %p270_p10 = scmp.ne.s32.totalorder %s155_s25, %s269_s26  ;;  %p275_p12 = scmp.lt.s32.totalorder %s269_s26, %s269_s26 }
  0x20   :  { %188 = vmatpush3.msra.mxu0 %v60_v1  ;;  %v51_v12 = vld [vmem:[#allocation4 + $0x28] sm:$0xff]  ;;  %v50_v13 = vld [vmem:[#allocation4 + $0x20] sm:$0xff]  ;;  %v49_v14 = vld [vmem:[#allocation4 + $0x18] sm:$0xff] }
  0x21   :  { %189 = vmatprep.subr.mxu0 %v59_v2  ;;  %217 = vmatprep.mubr.f32.mxu0 %v44_v6  ;;  %v48_v15 = vld [vmem:[#allocation4 + $0x10] sm:$0xff]  ;;  %v47_v16 = vld [vmem:[#allocation4 + $0x8] sm:$0xff]  ;;  %v46_v18 = vld [vmem:[#allocation4] sm:$0xff]  ;;  %p276_p13 = por %p275_p12, %p274_p11 }
  0x22   :  { %190 = vmatpush3.msra.mxu0 %v59_v2  ;;  %v43_v17 = vld [vmem:[#allocation7 + $0x8] sm:$0xff] }
  0x23   :  { %191 = vmatprep.subr.mxu0 %v58_v3  ;;  %v45_v19 = vmul.f32 %v43_v17, %v43_v17  ;;  %p277_p0 = pnand %p276_p13, %p270_p10 }
  0x24   :  { %192 = vmatpush3.msra.mxu0 %v58_v3 }
  0x25   :  { %193 = vmatprep.subr.mxu0 %v57_v5 }
  0x26   :  { %194 = vmatpush3.msra.mxu0 %v57_v5 }
  0x27   :  { %195 = vmatprep.subr.mxu0 %v56_v7 }
  0x28   :  { %196 = vmatpush3.msra.mxu0 %v56_v7 }
  0x29   :  { %197 = vmatprep.subr.mxu0 %v55_v8 }
  0x2a   :  { %198 = vmatpush3.msra.mxu0 %v55_v8 }
  0x2b   :  { %199 = vmatprep.subr.mxu0 %v54_v9 }
  0x2c   :  { %200 = vmatpush3.msra.mxu0 %v54_v9 }
  0x2d   :  { %201 = vmatprep.subr.mxu0 %v53_v10 }
  0x2e   :  { %202 = vmatpush3.msra.mxu0 %v53_v10 }
  0x2f   :  { %203 = vmatprep.subr.mxu0 %v52_v11 }
  0x30   :  { %204 = vmatpush3.msra.mxu0 %v52_v11 }
  0x31   :  { %205 = vmatprep.subr.mxu0 %v51_v12 }
  0x32   :  { %206 = vmatpush3.msra.mxu0 %v51_v12 }
  0x33   :  { %207 = vmatprep.subr.mxu0 %v50_v13 }
  0x34   :  { %208 = vmatpush3.msra.mxu0 %v50_v13 }
  0x35   :  { %209 = vmatprep.subr.mxu0 %v49_v14 }
  0x36   :  { %210 = vmatpush3.msra.mxu0 %v49_v14 }
  0x37   :  { %211 = vmatprep.subr.mxu0 %v48_v15 }
  0x38   :  { %212 = vmatpush3.msra.mxu0 %v48_v15 }
  0x39   :  { %213 = vmatprep.subr.mxu0 %v47_v16 }
  0x3a   :  { %214 = vmatpush3.msra.mxu0 %v47_v16 }
  0x3b   :  { %215 = vmatprep.subr.mxu0 %v46_v18 }
  0x3c   :  { %216 = vmatpush3.msra.mxu0 %v46_v18 }
  0x3d   :  { %218 = vmatmul.mubr.f32.vlgmr.msra.gmra.mxu0 %v45_v19 }
  0xfd   :  { %v219_v20 = vpop.f32.mrf.mxu0 }
  0xfe   :  { %v139_v21 = vmax.f32 %v219_v20, 1e-24 }
  0xff   :  { %v128_v22 = vpop.f32.mrf.mxu0 }
 0x100   :  { %225 = vrsqrt.f32 %v139_v21  ;;  %v138_v23 = vmax.f32 %v128_v22, 1e-24 }
 0x102   :  { %227 = vrsqrt.f32 %v138_v23 }
 0x10d   :  { %v226_v25 = vpop.eup %225 }
 0x10e   :  { %v144_v26 = vmul.f32 %v226_v25, %v142_v24 }
 0x10f   :  { %v228_v27 = vpop.eup %227 }
 0x110   :  { %v143_v28 = vmul.f32 %v228_v27, %v142_v24  ;;  %v146_v29 = vmul.f32 %v144_v26, %v43_v17 }
 0x112   :  { %v145_v30 = vmul.f32 %v143_v28, %v42_v4  ;;  %148 = vst [vmem:[#allocation9 + $0x8] sm:$0xff] %v146_v29 }
 0x114   :  { %147 = vst [vmem:[#allocation9] sm:$0xff] %v145_v30 }
 0x115   :  { %280 = shalt.err (!%p277_p0)
}
 0x116   :  { %160 = dma.vmem_to_hbm [thread:$0]  %s155_s25, 256, %s344_s3, [#allocation6], %s296_s15, %s296_s15, %s297_s16  }
 0x117   :  { %293 = dma.done.wait [#allocation6], 256  }
 0x118   :  { %294 = vsyncadd [#allocation6], 4294967040 }
 0x119   :  { %164 = vsyncpa [#allocation5], 1 }
 0x11a   :  { %165 = vsyncpa [#allocation8], 1 }
 0x11b   :  { %166 = vsyncpa [#allocation6], 1 }

</bundles_post_ra>
